<compile_context>
chip_gen: v7x
topology: tpu7x:2x2x1
jax: 0.10.0
libtpu: 0.0.40
codegen_flags: <defaults>
</compile_context>

<pallas_src>
import math

import numpy as np
import jax
import jax.numpy as jnp
from jax.experimental import pallas as pl
from jax.experimental.pallas import tpu as pltpu

F32 = jnp.float32
BF16 = jnp.bfloat16
PREC = jax.lax.Precision.HIGHEST   # reference / tiny-glue path only


def _round_up(x, m):
    return (x + m - 1) // m * m


# -----------------------------------------------------------------------------
# Positional encoding.
# NOTE: `PositionalEncoding(features=32)` is not given in the reference source; we assume a
# NeRF-style sin/cos encoding producing 3 * 2 * 32 = 192 features, matching the Linear(192,128).
def positional_encoding(coords, features=32):
    # [N, 3] -> [N, 192]  (reference layout)
    freqs = 2.0 ** jnp.arange(features, dtype=F32)                  # [F]
    ang = coords[:, :, None].astype(F32) * freqs[None, None, :]     # [N, 3, F]
    pe = jnp.concatenate([jnp.sin(ang), jnp.cos(ang)], axis=-1)     # [N, 3, 2F]
    return pe.reshape(coords.shape[0], -1)


def positional_encoding_t(coords_t, features=32):
    # [3, N] -> [192, N]; identical feature ordering to positional_encoding(), generated
    # directly in the transposed (vertices-on-lanes) layout -> no big-array transpose pass.
    freqs = 2.0 ** jnp.arange(features, dtype=F32)                  # [F]
    ang = coords_t[:, None, :].astype(F32) * freqs[None, :, None]   # [3, F, N]
    pe = jnp.concatenate([jnp.sin(ang), jnp.cos(ang)], axis=1)      # [3, 2F, N]
    return pe.reshape(3 * 2 * features, coords_t.shape[-1])


# -----------------------------------------------------------------------------
# Kernel 1: per-(layer,batch) 1x1-conv bottleneck  o = conv_w @ x  (bf16 MXU, f32 accumulate).
# Contracts C directly on the native NCHW layout ([D,C]@[C,HW]); output written in bf16.
# (At test shapes HW=64 < 128 leaves the lane dim half-filled here; the projection is a tiny,
#  N-independent fraction of total work, so we keep the transpose-free formulation.)
def _proj_kernel(a_ref, b_ref, o_ref):
    acc = jnp.dot(a_ref[...].astype(BF16), b_ref[...].astype(BF16),
                  preferred_element_type=F32)
    o_ref[...] = acc.astype(o_ref.dtype)


# -----------------------------------------------------------------------------
# Kernel 2: fused space/layer/scale selector MLPs, vertices on the lane axis.
# Layer-1 is one concatenated [3h,192]@[192,Nt] dot; layer-2 and the heads are three
# independent per-selector dots (no block-diagonal MXU waste), summed into one [3+L,Nt] slab.
# Output rows: 0:2 space(tanh) | 2:2+L layer(softmax) | 2+L scale(sigmoid)
#              | 3+L per-vertex entropy | 4+L per-vertex (scale-0.5)^2 | zero pad to 8-mult.
def make_selector_kernel(n_layers, hid, out_rows):
    HR = 3 + n_layers

    def kernel(pe_ref, w1_ref, b1_ref, w2_ref, b2_ref, w3_ref, out_ref):
        n_t = out_ref.shape[-1]
        h = jnp.dot(w1_ref[...], pe_ref[...], preferred_element_type=F32)    # [3h, Nt]
        # TODO(synk): PyTorch nn.GELU is exact (erf); tanh-approx GELU is used in-kernel
        # (the in-script reference uses the same approximation).
        h = jax.nn.gelu(h + b1_ref[...])

        # Three independent selector MLPs on static 128-row slices of h; per-head W3 dots
        # summed into a single [HR, Nt] result (avoids block-diag waste and sublane concat).
        heads = None
        for i in range(3):
            hi = jnp.dot(w2_ref[i], h[i * hid:(i + 1) * hid, :].astype(BF16),
                         preferred_element_type=F32)                          # [hid, Nt]
            hi = jax.nn.gelu(hi + b2_ref[i])
            part = jnp.dot(w3_ref[i], hi.astype(BF16),
                           preferred_element_type=F32)                        # [HR, Nt]
            heads = part if heads is None else heads + part

        sel_space = jnp.tanh(heads[0:2, :])                                   # [2, Nt]
        logits = heads[2:2 + n_layers, :]
        logits = logits - jnp.max(logits, axis=0, keepdims=True)
        e = jnp.exp(logits)
        denom = jnp.sum(e, axis=0, keepdims=True)
        sel_layer = e * pl.reciprocal(denom, approx=True)                     # [L, Nt]
        sel_scale = jax.nn.sigmoid(heads[2 + n_layers:HR, :])                 # [1, Nt]

        ent = jnp.sum(jnp.log(sel_layer + 1e-8) * sel_layer, axis=0, keepdims=True)
        sq = (sel_scale - 0.5) ** 2

        # Grouped row-range stores (kept instead of a single concatenated store: sublane-
        # unaligned concatenate lowering is not guaranteed on all Mosaic versions; the extra
        # masked stores are a minor cost).
        out_ref[0:2, :] = sel_space
        out_ref[2:2 + n_layers, :] = sel_layer
        out_ref[2 + n_layers:3 + n_layers, :] = sel_scale
        out_ref[3 + n_layers:4 + n_layers, :] = ent
        out_ref[4 + n_layers:5 + n_layers, :] = sq
        if out_rows > 5 + n_layers:
            out_ref[5 + n_layers:, :] = jnp.zeros((out_rows - (5 + n_layers), n_t), F32)

    return kernel


# -----------------------------------------------------------------------------
# Kernel 3: fused bilinear grid_sample (as [B*D,HW]@[HW,Nt] matmuls over all L layers),
# layer-softmax mixing, scale blending with the global path, and linear readout.
# Grid = (N tiles,) only; the whole [L,B*D,HW] local slab and the [B*D,L] global slab are
# grid-invariant blocks (constant index_map -> fetched into VMEM once, never re-streamed).
def make_fusion_kernel(B, H, W, D, L):
    HW = H * W

    def kernel(sel_ref, local_ref, global_ref, wt_ref, b_ref, y_ref):
        n_t = y_ref.shape[-1]

        # PyTorch grid_sample semantics: align_corners=False, padding_mode='zeros',
        # grid[...,0]=x (width), grid[...,1]=y (height), both in [-1,1].
        xs = sel_ref[0:1, :]                                          # [1, Nt]
        ys = sel_ref[1:2, :]
        ix = ((xs + 1.0) * W - 1.0) * 0.5
        iy = ((ys + 1.0) * H - 1.0) * 0.5
        hw = jax.lax.broadcasted_iota(jnp.int32, (HW, n_t), 0).astype(F32)
        hh = jnp.floor(hw / W)
        ww = hw - hh * W
        wy = jnp.maximum(1.0 - jnp.abs(iy - hh), 0.0)                 # [HW, Nt]
        wx = jnp.maximum(1.0 - jnp.abs(ix - ww), 0.0)
        interp = (wy * wx).astype(BF16)                               # bilinear weights

        sel_layer = sel_ref[2:2 + L, :]                               # [L, Nt]
        scale = sel_ref[2 + L:3 + L, :]                               # [1, Nt]

        # Layer loop in-body: one [B*D,HW]@[HW,Nt] MXU call per layer against the resident
        # VMEM slab; accumulator initialized with the first term (no zero-fill pass).
        acc = None
        for l in range(L):
            sampled = jnp.dot(local_ref[l], interp,
                              preferred_element_type=F32)             # [B*D, Nt]
            term = sel_layer[l:l + 1, :] * sampled
            acc = term if acc is None else acc + term

        v_global = jnp.dot(global_ref[...], sel_layer.astype(BF16),
                           preferred_element_type=F32)                # [B*D, Nt]
        v = (1.0 - scale) * acc + scale * v_global

        wt = wt_ref[...]                                              # [D, Nt] (pre-scaled 1/D)
        bias = b_ref[...]                                             # [1, Nt]
        for b in range(B):                                            # B tiny & static
            vb = v[b * D:(b + 1) * D, :]
            y_ref[b:b + 1, :] = jnp.sum(vb * wt, axis=0, keepdims=True) + bias

    return kernel


# -----------------------------------------------------------------------------
# Full forward pass (Pallas pipeline).
def factor_topy_forward(params, local_tokens, global_tokens, coords, n_tile=256):
    layers = list(local_tokens.keys())
    assert layers == list(global_tokens.keys())
    L = len(layers)

    x = jnp.stack([local_tokens[k] for k in layers], axis=0)        # [L,B,C,H,W]
    g = jnp.stack([global_tokens[k] for k in layers], axis=0)       # [L,B,C]
    _, B, C, H, W = x.shape
    HW = H * W
    D = params["conv_w"].shape[1]
    N = coords.shape[0]

    # ---- local bottleneck projections (Pallas, bf16 MXU) ---------------------------
    x_lbchw = x.reshape(L, B, C, HW)
    local_bd = pl.pallas_call(
        _proj_kernel,
        out_shape=jax.ShapeDtypeStruct((L, B, D, HW), BF16),
        grid=(L, B),
        in_specs=[pl.BlockSpec((None, D, C), lambda l, b: (l, 0, 0)),
                  pl.BlockSpec((None, None, C, HW), lambda l, b: (l, b, 0, 0))],
        out_specs=pl.BlockSpec((None, None, D, HW), lambda l, b: (l, b, 0, 0)),
        compiler_params=pltpu.CompilerParams(
            dimension_semantics=("parallel", "parallel")),
    )(params["conv_w"], x_lbchw)
    local_t = local_bd.reshape(L, B * D, HW)                         # free reshape

    # ---- global bottleneck projections (tiny M=B matmuls; plain XLA) ---------------
    global_bd = jnp.einsum('lbc,ldc->lbd', g, params["lin_w"], precision=PREC)  # [L,B,D]
    global_t = jnp.transpose(global_bd, (1, 2, 0)).reshape(B * D, L).astype(BF16)

    # ---- fused selector MLPs (Pallas, vertices on the lane axis, N tiled) ----------
    # N_pad multiple of 2*n_tile -> even split of the "parallel" axis over v7x's 2 TCs.
    N_pad = _round_up(max(N, 1), 2 * n_tile)
    num_nt = N_pad // n_tile
    coords_pad = jnp.pad(coords.astype(F32), ((0, N_pad - N), (0, 0)))
    pe_t = positional_encoding_t(coords_pad.T).astype(BF16)          # [192, N_pad]
    pe_dim = pe_t.shape[0]
    hid = params["space_w1"].shape[0]                                # 128
    H3 = 3 * hid
    HR = 3 + L

    w1 = jnp.concatenate([params["space_w1"], params["layer_w1"],
                          params["scale_w1"]], axis=0).astype(BF16)  # [3h, 192]
    b1 = jnp.concatenate([params["space_b1"], params["layer_b1"],
                          params["scale_b1"]])[:, None].astype(F32)  # [3h, 1]
    w2 = jnp.stack([params["space_w2"], params["layer_w2"],
                    params["scale_w2"]], axis=0).astype(BF16)        # [3, hid, hid]
    b2 = jnp.stack([params["space_b2"], params["layer_b2"],
                    params["scale_b2"]], axis=0)[:, :, None].astype(F32)  # [3, hid, 1]
    w3 = jnp.zeros((3, HR, hid), F32)
    w3 = w3.at[0, 0:2, :].set(params["space_w3"])
    w3 = w3.at[1, 2:2 + L, :].set(params["layer_w3"])
    w3 = w3.at[2, 2 + L:, :].set(params["scale_w3"])
    w3 = w3.astype(BF16)                                             # [3, HR, hid]

    SEL_ROWS = 5 + L                       # space(2) | layer(L) | scale(1) | ent(1) | sq(1)
    SEL_ROWS_PAD = _round_up(SEL_ROWS, 8)
    sel_all = pl.pallas_call(
        make_selector_kernel(L, hid, SEL_ROWS_PAD),
        out_shape=jax.ShapeDtypeStruct((SEL_ROWS_PAD, N_pad), F32),
        grid=(num_nt,),
        in_specs=[pl.BlockSpec((pe_dim, n_tile), lambda i: (0, i)),
                  pl.BlockSpec((H3, pe_dim), lambda i: (0, 0)),
                  pl.BlockSpec((H3, 1), lambda i: (0, 0)),
                  pl.BlockSpec((3, hid, hid), lambda i: (0, 0, 0)),
                  pl.BlockSpec((3, hid, 1), lambda i: (0, 0, 0)),
                  pl.BlockSpec((3, HR, hid), lambda i: (0, 0, 0))],
        out_specs=pl.BlockSpec((SEL_ROWS_PAD, n_tile), lambda i: (0, i)),
        compiler_params=pltpu.CompilerParams(dimension_semantics=("parallel",)),
    )(pe_t, w1, b1, w2, b2, w3)

    # regularizer finished in glue (per-vertex partial rows; padded columns excluded).
    reg = (jnp.mean(sel_all[3 + L, :N]) / math.log(L)
           + jnp.mean(sel_all[4 + L, :N]))

    # ---- fused grid_sample + layer/scale mixing + readout (Pallas) -----------------
    out_w_t = jnp.zeros((D, N_pad), F32).at[:, :N].set(params["out_w"].T / D)
    out_b = jnp.zeros((1, N_pad), F32).at[0, :N].set(params["out_b"])

    y_pad = pl.pallas_call(
        make_fusion_kernel(B, H, W, D, L),
        out_shape=jax.ShapeDtypeStruct((B, N_pad), F32),
        grid=(num_nt,),
        in_specs=[pl.BlockSpec((SEL_ROWS_PAD, n_tile), lambda nt: (0, nt)),
                  # grid-invariant blocks: fetched once, resident in VMEM for all tiles
                  pl.BlockSpec((L, B * D, HW), lambda nt: (0, 0, 0)),
                  pl.BlockSpec((B * D, L), lambda nt: (0, 0)),
                  pl.BlockSpec((D, n_tile), lambda nt: (0, nt)),
                  pl.BlockSpec((1, n_tile), lambda nt: (0, nt))],
        out_specs=pl.BlockSpec((B, n_tile), lambda nt: (0, nt)),
        compiler_params=pltpu.CompilerParams(
            dimension_semantics=("parallel",),
            # Whole-L local slab + per-tile buffers stay in the low-MiB range even at
            # n_tile=512 / ViT-scale HW; 32 MiB scoped budget fits v5e/v6e/v7x (64 MiB phys).
            vmem_limit_bytes=32 * 1024 * 1024),
    )(sel_all, local_t, global_t, out_w_t, out_b)

    return y_pad[:, :N], reg


# -----------------------------------------------------------------------------
# Pure-JAX reference (mirrors the PyTorch forward, incl. grid_sample with 4-corner gather).
def _grid_sample_ref(img, sel_space):
    # img: [B, D, H, W]; sel_space: [N, 2] -> [B, N, D]
    B, D, H, W = img.shape
    xs, ys = sel_space[:, 0], sel_space[:, 1]
    ix = ((xs + 1.0) * W - 1.0) / 2.0
    iy = ((ys + 1.0) * H - 1.0) / 2.0
    x0, y0 = jnp.floor(ix), jnp.floor(iy)
    out = jnp.zeros((B, sel_space.shape[0], D), F32)
    for dx in (0.0, 1.0):
        for dy in (0.0, 1.0):
            xc, yc = x0 + dx, y0 + dy
            wgt = (1.0 - jnp.abs(ix - xc)) * (1.0 - jnp.abs(iy - yc))
            valid = (xc >= 0) & (xc <= W - 1) & (yc >= 0) & (yc <= H - 1)
            xi = jnp.clip(xc, 0, W - 1).astype(jnp.int32)
            yi = jnp.clip(yc, 0, H - 1).astype(jnp.int32)
            vals = jnp.transpose(img[:, :, yi, xi], (0, 2, 1))          # [B,N,D]
            out = out + vals * (wgt * valid)[None, :, None]
    return out


def factor_topy_reference(params, local_tokens, global_tokens, coords):
    layers = list(local_tokens.keys())
    L = len(layers)
    pe = positional_encoding(coords)

    def mlp(w1, b1, w2, b2, w3):
        h = jax.nn.gelu(jnp.matmul(pe, w1.T, precision=PREC) + b1)
        h = jax.nn.gelu(jnp.matmul(h, w2.T, precision=PREC) + b2)
        return jnp.matmul(h, w3.T, precision=PREC)

    sel_space = jnp.tanh(mlp(params["space_w1"], params["space_b1"],
                             params["space_w2"], params["space_b2"], params["space_w3"]))
    sel_layer = jax.nn.softmax(mlp(params["layer_w1"], params["layer_b1"],
                                   params["layer_w2"], params["layer_b2"],
                                   params["layer_w3"]), axis=-1)
    sel_scale = jax.nn.sigmoid(mlp(params["scale_w1"], params["scale_b1"],
                                   params["scale_w2"], params["scale_b2"],
                                   params["scale_w3"]))

    ent = jnp.mean(jnp.sum(jnp.log(sel_layer + 1e-8) * sel_layer, axis=-1))
    reg = ent / np.log(L) + jnp.mean((sel_scale - 0.5) ** 2)

    loc_b = [jnp.einsum('bchw,dc->bdhw', local_tokens[k], params["conv_w"][i],
                        precision=PREC) for i, k in enumerate(layers)]
    glob_b = [jnp.matmul(global_tokens[k], params["lin_w"][i].T, precision=PREC)
              for i, k in enumerate(layers)]

    gstack = jnp.stack(glob_b, axis=-1)                                  # [B,D,L]
    v_global = jnp.einsum('bdl,nl->bnd', gstack, sel_layer, precision=PREC)

    v_local = 0.0
    for i in range(L):
        v_local = v_local + _grid_sample_ref(loc_b[i], sel_space) * sel_layer[None, :, i:i + 1]

    v = (1.0 - sel_scale[None]) * v_local + sel_scale[None] * v_global
    y = jnp.mean(v * params["out_w"][None], axis=-1) + params["out_b"][None]
    return y, reg


# -----------------------------------------------------------------------------
if __name__ == "__main__":
    key = jax.random.PRNGKey(0)
    L = 4            # number of backbone layers (module default: 12)
    width = 64       # per-layer token width (module default: 768)
    D = 128          # bottleneck_dim (module default)
    B = 2            # batch
    H = W = 8        # local-token spatial size
    N = 200          # n_vertices (internally padded/tiled to 256-lane tiles)

    keys = list(jax.random.split(key, 32))
    k = iter(keys)

    params = {
        "conv_w": jax.random.normal(next(k), (L, D, width), F32) / np.sqrt(width),
        "lin_w": jax.random.normal(next(k), (L, D, width), F32) / np.sqrt(width),
        "out_w": jax.random.normal(next(k), (N, D), F32) / np.sqrt(D),
        "out_b": jax.random.normal(next(k), (N,), F32) * 0.1,
    }
    for name, od in (("space", 2), ("layer", L), ("scale", 1)):
        params[f"{name}_w1"] = jax.random.normal(next(k), (128, 192), F32) / np.sqrt(192)
        params[f"{name}_b1"] = jax.random.normal(next(k), (128,), F32) * 0.1
        params[f"{name}_w2"] = jax.random.normal(next(k), (128, 128), F32) / np.sqrt(128)
        params[f"{name}_b2"] = jax.random.normal(next(k), (128,), F32) * 0.1
        # NOTE: the module zero-inits the final selector weights (degenerate selectors);
        # we use small deterministic random values so the bilinear/softmax paths are exercised.
        params[f"{name}_w3"] = jax.random.normal(next(k), (od, 128), F32) / np.sqrt(128)

    local_tokens, global_tokens = {}, {}
    for i in range(L):
        local_tokens[str(i)] = jax.random.normal(next(k), (B, width, H, W), F32)   # NCHW
        global_tokens[str(i)] = jax.random.normal(next(k), (B, width), F32)
    coords = jax.random.uniform(next(k), (N, 3), F32, minval=-1.0, maxval=1.0)

    y, reg = factor_topy_forward(params, local_tokens, global_tokens, coords, n_tile=256)
    y = jax.block_until_ready(y)
    reg = jax.block_until_ready(reg)

    y_ref, reg_ref = factor_topy_reference(params, local_tokens, global_tokens, coords)
    assert y.shape == (B, N)
    # bf16 MXU operands (f32 accumulation) + approx softmax reciprocal vs the all-f32
    # reference -> tolerances loosened.
    np.testing.assert_allclose(np.asarray(y), np.asarray(y_ref), rtol=1e-2, atol=1e-2)
    np.testing.assert_allclose(float(reg), float(reg_ref), rtol=1e-2, atol=1e-2)

    print("KERNEL_OK")
</pallas_src>

<mosaic_0001>
module attributes {stable_mosaic.version = 11 : i64} {
  func.func @_proj_kernel(%arg0: i32, %arg1: i32, %arg2: memref<1x128x64xf32, #tpu.memory_space<vmem>>, %arg3: memref<1x1x64x64xf32, #tpu.memory_space<vmem>>, %arg4: memref<1x1x128x64xbf16, #tpu.memory_space<vmem>>) attributes {dimension_semantics = [#tpu.dimension_semantics<parallel>, #tpu.dimension_semantics<parallel>], iteration_bounds = array<i64: 4, 2>, scalar_prefetch = 0 : i64, scratch_operands = 0 : i64, tpu.core_type = #tpu.core_type<tc>, window_params = [{transform_indices = @transform_0, window_bounds = array<i64: 1, 128, 64>}, {transform_indices = @transform_1, window_bounds = array<i64: 1, 1, 64, 64>}, {transform_indices = @transform_2, window_bounds = array<i64: 1, 1, 128, 64>}]} {
    %c0 = arith.constant 0 : index
    %c0_0 = arith.constant 0 : index
    %c0_1 = arith.constant 0 : index
    %0 = vector.load %arg2[%c0, %c0_0, %c0_1] : memref<1x128x64xf32, #tpu.memory_space<vmem>>, vector<1x128x64xf32>
    %1 = vector.shape_cast %0 : vector<1x128x64xf32> to vector<128x64xf32>
    %2 = arith.truncf %1 : vector<128x64xf32> to vector<128x64xbf16>
    %c0_2 = arith.constant 0 : index
    %c0_3 = arith.constant 0 : index
    %c0_4 = arith.constant 0 : index
    %c0_5 = arith.constant 0 : index
    %3 = vector.load %arg3[%c0_2, %c0_3, %c0_4, %c0_5] : memref<1x1x64x64xf32, #tpu.memory_space<vmem>>, vector<1x1x64x64xf32>
    %4 = vector.shape_cast %3 : vector<1x1x64x64xf32> to vector<64x64xf32>
    %5 = arith.truncf %4 : vector<64x64xf32> to vector<64x64xbf16>
    %cst = arith.constant dense<0.000000e+00> : vector<128x64xf32>
    %6 = tpu.matmul %2, %5, %cst {dimension_numbers = #tpu.dot_dimension_numbers<[1], [0], [0], [1], [0, 0, 1, 1], [], []>} : vector<128x64xbf16>, vector<64x64xbf16>, vector<128x64xf32> -> vector<128x64xf32>
    %7 = arith.truncf %6 : vector<128x64xf32> to vector<128x64xbf16>
    %c0_6 = arith.constant 0 : index
    %c0_7 = arith.constant 0 : index
    %c0_8 = arith.constant 0 : index
    %c0_9 = arith.constant 0 : index
    %8 = vector.load %arg4[%c0_6, %c0_7, %c0_8, %c0_9] : memref<1x1x128x64xbf16, #tpu.memory_space<vmem>>, vector<1x1x128x64xbf16>
    %9 = vector.shape_cast %8 : vector<1x1x128x64xbf16> to vector<128x64xbf16>
    %10 = vector.shape_cast %7 : vector<128x64xbf16> to vector<1x1x128x64xbf16>
    tpu.vector_store %arg4[%c0_6, %c0_7, %c0_8, %c0_9], %10 {strides = array<i32>} : memref<1x1x128x64xbf16, #tpu.memory_space<vmem>>, vector<1x1x128x64xbf16>,
    return
  }
  func.func @transform_0(%arg0: i32, %arg1: i32) -> (i32, i32, i32) {
    %c0_i32 = arith.constant 0 : i32
    %c0_i32_0 = arith.constant 0 : i32
    %c0_i32_1 = arith.constant 0 : i32
    return %arg0, %c0_i32, %c0_i32_0 : i32, i32, i32
  }
  func.func @transform_1(%arg0: i32, %arg1: i32) -> (i32, i32, i32, i32) {
    %c0_i32 = arith.constant 0 : i32
    %c0_i32_0 = arith.constant 0 : i32
    %c0_i32_1 = arith.constant 0 : i32
    return %arg0, %arg1, %c0_i32, %c0_i32_0 : i32, i32, i32, i32
  }
  func.func @transform_2(%arg0: i32, %arg1: i32) -> (i32, i32, i32, i32) {
    %c0_i32 = arith.constant 0 : i32
    %c0_i32_0 = arith.constant 0 : i32
    %c0_i32_1 = arith.constant 0 : i32
    return %arg0, %arg1, %c0_i32, %c0_i32_0 : i32, i32, i32, i32
  }
}

</mosaic_0001>

<bundles_post_ra>
// kernel: tpu_custom_call.1
= control target key start
LH: loop header
LB: loop body
LE: loop exit
PB: predicated region body
PF: predicated region fallthrough
CT: control target
= control target key end

     0   :  { %s742_s9 = smov 0   ;;  %s744_s10 = smov 0   ;;  %s859_s0 = inlined_call_operand.vmem [shape: f32[4,128,64], index: 0, kind: input, shape index: {}]   ;;  %s860_s1 = inlined_call_operand.vmem [shape: f32[4,2,64,64], index: 1, kind: input, shape index: {}]   ;;  %s861_s2 = inlined_call_operand.vmem [shape: bf16[4,2,128,64], index: 2, kind: output, shape index: {}]  }
   0x1   :  { %s746_s11 = smov 0   ;;  %s748_s12 = smov 0  }
   0x2   :  { %s750_s13 = smov 0  }
   0x3 LB: > { %s21_s14 = sadd.s32 1, %s717_s11  ;;  %s24_s15 = sadd.s32 1, %s721_s12  ;;  %s725_s13 = sphi %s750_s13, %s12_s13   ;;  %s721_s12 = sphi %s748_s12, %s865_s12   ;;  %s717_s11 = sphi %s746_s11, %s864_s11   ;;  %s713_s10 = sphi %s744_s10, %s863_s10   ;;  %s709_s9 = sphi %s742_s9, %s862_s9  }
   0x4   : > { %p22_p0 = scmp.ge.s32.totalorder %s21_s14, 2  ;;  %p551_p1 = scmp.ge.s32.totalorder %s725_s13, 1 }
   0x5   : > { %p142_p2 = scmp.lt.s32.totalorder %s725_s13, 9 }
   0x6   : > { %s867_s14 = smov (%p22_p0, %s21_s14), 0  ;;  %s869_s15 = smov (!%p22_p0, %s24_s15), %s721_s12 }
   0x7   : > { %p143_p3 = pnand %p551_p1, %p142_p2  ;;  %p26_p4 = scmp.ge.s32.totalorder %s869_s15, 4 }
   0x8   : > { %p177_p5 = scmp.lt.s32.totalorder (!%p143_p3), %s713_s10, 3  ;;  %p184_p6 = scmp.lt.s32.totalorder (!%p143_p3), %s709_s9, 1  ;;  %vm237_vm0 = vcmask (!%p143_p3), 523264   ;;  %vm423_vm1 = vcmask (!%p143_p3), 519168  }
   0x9   : > { %s871_s15 = smov (%p26_p4, %s869_s15), 0  ;;  %146 = sbr.rel (%p143_p3) target bundleno = 267 (0x10b), region = 28 }
  0x10   : > { %s873_s10 = smov (!%p177_p5, %s713_s10), 3  ;;  %s875_s9 = smov (!%p184_p6, %s709_s9), 1 }
  0x11   : > { %s586_s16 = sshll.u32 %s873_s10, 7  ;;  %s555_s17 = sshll.u32 %s873_s10, 4 }
  0x12   : > { %s775_s20 = scalar_lea.vmem %s859_s0, %s586_s16  ;;  %s554_s21 = sshll.u32 %s875_s9, 3 }
  0x13   : > { %s188_s22 = sadd.s32 %s555_s17, %s554_s21  ;;  %s557_s23 = sshll.u32 %s875_s9, 4  ;;  %v201_v0 = vld [vmem:[%s775_s20] sm:$0xff]  ;;  %v202_v1 = vld [vmem:[%s775_s20 + $0x8] sm:$0xff]  ;;  %v203_v18 = vld [vmem:[%s775_s20 + $0x10] sm:$0xff] }
  0x14   : > { %v209_v2 = vld [vmem:[%s775_s20 + $0x40] sm:$0xff]  ;;  %s556_s24 = sshll.u32 %s188_s22, 3  ;;  %s558_s25 = sshll.u32 %s873_s10, 5  ;;  %v217_v3 = vpack.c.bf16 %v202_v1, %v201_v0  ;;  %v210_v4 = vld [vmem:[%s775_s20 + $0x48] sm:$0xff]  ;;  %v204_v19 = vld [vmem:[%s775_s20 + $0x18] sm:$0xff] }
  0x15   : > { %s190_s28 = scalar_lea.vmem %s860_s1, %s556_s24  ;;  %s784_s29 = sadd.s32 %s558_s25, %s557_s23  ;;  %v221_v5 = vpack.c.bf16 %v210_v4, %v209_v2  ;;  %v211_v20 = vld [vmem:[%s775_s20 + $0x50] sm:$0xff]  ;;  %v212_v21 = vld [vmem:[%s775_s20 + $0x58] sm:$0xff]  ;;  %v205_v22 = vld [vmem:[%s775_s20 + $0x20] sm:$0xff]  ;;  %v218_v26 = vpack.c.bf16 %v204_v19, %v203_v18 }
  0x16   : > { %v225_v6 = vld [vmem:[%s190_s28] sm:$0xff]  ;;  %v226_v7 = vld [vmem:[%s190_s28 + $0x8] sm:$0xff]  ;;  %v227_v8 = vld [vmem:[%s190_s28 + $0x10] sm:$0xff]  ;;  %623 = vmatprep.mubr.msk.bf16.mxu0 %vm237_vm0, %v217_v3  ;;  %v222_v27 = vpack.c.bf16 %v212_v21, %v211_v20  ;;  %s559_s30 = sshll.u32 %s784_s29, 2 }
  0x17   : > { %v233_v9 = vpack.c.bf16 %v226_v7, %v225_v6  ;;  %v228_v10 = vld [vmem:[%s190_s28 + $0x18] sm:$0xff]  ;;  %631 = vmatprep.mubr.msk.bf16.mxu1 %vm237_vm0, %v221_v5  ;;  %v229_v12 = vld [vmem:[%s190_s28 + $0x20] sm:$0xff]  ;;  %v230_v13 = vld [vmem:[%s190_s28 + $0x28] sm:$0xff]  ;;  %s810_s5 = scalar_lea.vmem %s861_s2, %s559_s30 }
  0x18   : > { %v234_v11 = vpack.c.bf16 %v228_v10, %v227_v8  ;;  %v235_v14 = vpack.c.bf16 %v230_v13, %v229_v12  ;;  %v231_v15 = vld [vmem:[%s190_s28 + $0x30] sm:$0xff]  ;;  %v232_v16 = vld [vmem:[%s190_s28 + $0x38] sm:$0xff]  ;;  %v206_v23 = vld [vmem:[%s775_s20 + $0x28] sm:$0xff] }
  0x19   : > { %615 = vmatprep.subr.bf16.mxu0 %v233_v9  ;;  %639 = vmatprep.subr.bf16.mxu1 %v233_v9  ;;  %v236_v17 = vpack.c.bf16 %v232_v16, %v231_v15  ;;  %v213_v24 = vld [vmem:[%s775_s20 + $0x60] sm:$0xff]  ;;  %v214_v25 = vld [vmem:[%s775_s20 + $0x68] sm:$0xff]  ;;  %v219_v28 = vpack.c.bf16 %v206_v23, %v205_v22  ;;  %v207_v30 = vld [vmem:[%s775_s20 + $0x30] sm:$0xff] }
  0x1a   : > { %616 = vmatpush3.bf16.msra.mxu0 %v233_v9  ;;  %643 = vmatpush3.bf16.msra.mxu1 %v233_v9  ;;  %v223_v29 = vpack.c.bf16 %v214_v25, %v213_v24  ;;  %v208_v31 = vld [vmem:[%s775_s20 + $0x38] sm:$0xff]  ;;  %v215_v32 = vld [vmem:[%s775_s20 + $0x70] sm:$0xff] }
  0x1b   : > { %617 = vmatprep.subr.bf16.mxu0 %v234_v11  ;;  %640 = vmatprep.subr.bf16.mxu1 %v234_v11  ;;  %v216_v33 = vld [vmem:[%s775_s20 + $0x78] sm:$0xff]  ;;  %v220_v34 = vpack.c.bf16 %v208_v31, %v207_v30 }
  0x1c   : > { %v224_v35 = vpack.c.bf16 %v216_v33, %v215_v32 }
  0x1e   : > { %618 = vmatpush3.bf16.msra.mxu0 %v234_v11  ;;  %644 = vmatpush3.bf16.msra.mxu1 %v234_v11 }
  0x1f   : > { %619 = vmatprep.subr.bf16.mxu0 %v235_v14  ;;  %641 = vmatprep.subr.bf16.mxu1 %v235_v14 }
  0x22   : > { %620 = vmatpush3.bf16.msra.mxu0 %v235_v14  ;;  %645 = vmatpush3.bf16.msra.mxu1 %v235_v14 }
  0x23   : > { %621 = vmatprep.subr.bf16.mxu0 %v236_v17  ;;  %642 = vmatprep.subr.bf16.mxu1 %v236_v17 }
  0x26   : > { %622 = vmatpush3.bf16.msra.mxu0 %v236_v17  ;;  %646 = vmatpush3.bf16.msra.mxu1 %v236_v17 }
  0x29   : > { %624 = vmatmul.mubr.msk.bf16.vlgmr.msra.gmra.mrb[0].mxu0 %vm237_vm0, %v218_v26  ;;  %632 = vmatmul.mubr.msk.bf16.vlgmr.msra.gmra.mrb[0].mxu1 %vm237_vm0, %v222_v27 }
  0x2a   : > { %627 = vmatprep.mubr.msk.bf16.mxu0 %vm237_vm0, %v219_v28  ;;  %635 = vmatprep.mubr.msk.bf16.mxu1 %vm237_vm0, %v223_v29 }
  0x31   : > { %628 = vmatmul.mubr.msk.bf16.gmra.mrb[4].mxu0 %vm237_vm0, %v220_v34  ;;  %636 = vmatmul.mubr.msk.bf16.gmra.mrb[4].mxu1 %vm237_vm0, %v224_v35 }
  0xfc   : > { %v625_v36 = vpop.f32.mrb[0].mxu0  ;;  %v633_v37 = vpop.f32.mrb[0].mxu1 }
  0xfd   : > { %v589_v38 = vpack.c.bf16 %v625_v36, %v625_v36  ;;  %v597_v39 = vpack.c.bf16 %v633_v37, %v633_v37  ;;  %v296_v40 = vpop.f32.mrb[1].mxu0  ;;  %v328_v41 = vpop.f32.mrb[1].mxu1 }
  0xfe   : > { %v587_v42 = vpack.c.bf16 %v296_v40, %v296_v40  ;;  %v595_v43 = vpack.c.bf16 %v328_v41, %v328_v41  ;;  %v626_v44 = vpop.f32.mrb[2].mxu0  ;;  %v634_v45 = vpop.f32.mrb[2].mxu1 }
  0xff   : > { %426 = vst.msk [vmem:[%s810_s5 + $0x8] sm:$0xf] %vm423_vm1, %v589_v38  ;;  %434 = vst.msk [vmem:[%s810_s5 + $0x28] sm:$0xf] %vm423_vm1, %v597_v39  ;;  %v590_v46 = vpack.c.bf16 %v626_v44, %v626_v44  ;;  %v598_v47 = vpack.c.bf16 %v634_v45, %v634_v45  ;;  %v299_v48 = vpop.f32.mrb[3].mxu0  ;;  %v331_v49 = vpop.f32.mrb[3].mxu1 }
 0x100   : > { %424 = vst.msk [vmem:[%s810_s5] sm:$0xf] %vm423_vm1, %v587_v42  ;;  %432 = vst.msk [vmem:[%s810_s5 + $0x20] sm:$0xf] %vm423_vm1, %v595_v43  ;;  %v588_v50 = vpack.c.bf16 %v299_v48, %v299_v48  ;;  %v596_v51 = vpack.c.bf16 %v331_v49, %v331_v49 }
 0x101   : > { %427 = vst.msk [vmem:[%s810_s5 + $0xc] sm:$0xf] %vm423_vm1, %v590_v46  ;;  %435 = vst.msk [vmem:[%s810_s5 + $0x2c] sm:$0xf] %vm423_vm1, %v598_v47 }
 0x102   : > { %425 = vst.msk [vmem:[%s810_s5 + $0x4] sm:$0xf] %vm423_vm1, %v588_v50  ;;  %433 = vst.msk [vmem:[%s810_s5 + $0x24] sm:$0xf] %vm423_vm1, %v596_v51 }
 0x104   : > { %v629_v52 = vpop.f32.mrb[4].mxu0  ;;  %v637_v53 = vpop.f32.mrb[4].mxu1 }
 0x105   : > { %v593_v54 = vpack.c.bf16 %v629_v52, %v629_v52  ;;  %v601_v55 = vpack.c.bf16 %v637_v53, %v637_v53  ;;  %v312_v56 = vpop.f32.mrb[5].mxu0  ;;  %v344_v57 = vpop.f32.mrb[5].mxu1 }
 0x106   : > { %v591_v58 = vpack.c.bf16 %v312_v56, %v312_v56  ;;  %v599_v59 = vpack.c.bf16 %v344_v57, %v344_v57  ;;  %v630_v60 = vpop.f32.mrb[6].mxu0  ;;  %v638_v61 = vpop.f32.mrb[6].mxu1 }
 0x107   : > { %430 = vst.msk [vmem:[%s810_s5 + $0x18] sm:$0xf] %vm423_vm1, %v593_v54  ;;  %438 = vst.msk [vmem:[%s810_s5 + $0x38] sm:$0xf] %vm423_vm1, %v601_v55  ;;  %v594_v62 = vpack.c.bf16 %v630_v60, %v630_v60  ;;  %v602_v63 = vpack.c.bf16 %v638_v61, %v638_v61  ;;  %v315_v0 = vpop.f32.mrb[7].mxu0  ;;  %v347_v1 = vpop.f32.mrb[7].mxu1 }
 0x108   : > { %428 = vst.msk [vmem:[%s810_s5 + $0x10] sm:$0xf] %vm423_vm1, %v591_v58  ;;  %436 = vst.msk [vmem:[%s810_s5 + $0x30] sm:$0xf] %vm423_vm1, %v599_v59  ;;  %v592_v2 = vpack.c.bf16 %v315_v0, %v315_v0  ;;  %v600_v3 = vpack.c.bf16 %v347_v1, %v347_v1 }
 0x109   : > { %431 = vst.msk [vmem:[%s810_s5 + $0x1c] sm:$0xf] %vm423_vm1, %v594_v62  ;;  %439 = vst.msk [vmem:[%s810_s5 + $0x3c] sm:$0xf] %vm423_vm1, %v602_v63 }
 0x10a   : > { %429 = vst.msk [vmem:[%s810_s5 + $0x14] sm:$0xf] %vm423_vm1, %v592_v2  ;;  %437 = vst.msk [vmem:[%s810_s5 + $0x34] sm:$0xf] %vm423_vm1, %v600_v3 }
 0x10b PF: > { %s12_s13 = sadd.s32 1, %s725_s13   ;;  %s862_s9 = smov %s717_s11 }
 0x10c   : > { %p9_p7 = scmp.ge.s32.totalorder %s12_s13, 10   ;;  %s863_s10 = smov %s721_s12 }
 0x10d   : > { %s864_s11 = smov %s867_s14  ;;  %s865_s12 = smov %s871_s15 }
 0x10e   :  { %11 = sbr.rel (!%p9_p7) target bundleno = 3 (0x3), region = 61 }

</bundles_post_ra>
